<compile_context>
chip_gen: v7x
topology: tpu7x:2x2x1
jax: 0.10.0
libtpu: 0.0.40
codegen_flags: <defaults>
</compile_context>

<pallas_src>
import functools
import math

import jax
import jax.numpy as jnp
from jax.experimental import pallas as pl
from jax.experimental.pallas import tpu as pltpu


def _round_up(x, m):
    return (x + m - 1) // m * m


def _vmem_capacity_bytes():
    try:
        return int(pltpu.get_tpu_info().vmem_capacity_bytes)
    except Exception:
        return 64 * 1024 * 1024          # v7x per-TC VMEM: safe lower bound


def _choose_tiles(B, d_in, d_out_p, x_isz, w_isz, o_isz, vmem_budget):
    """Pick (batch tile, d_out tile) so the pipeline fits the VMEM budget."""
    tb_cap = min(_round_up(B, 8), 1024)
    tb_opts = sorted({c for c in (1024, 512, 384, 256, 128, 64, 32, 16, 8)
                      if c <= tb_cap} | {tb_cap}, reverse=True)
    tn_opts = sorted({c for c in (4096, 2048, 1024, 512, 256, 128)
                      if c < d_out_p} | {d_out_p}, reverse=True)

    def vmem_bytes(tb, tn):
        # Conservative: assume everything double-buffered (the caller
        # additionally single-buffers grid-invariant operands when supported).
        return (2 * tb * d_in * x_isz          # x tile
                + 2 * d_in * tn * w_isz        # W^T tile
                + 2 * tn * 4                   # bias tile (f32)
                + 2 * tb * tn * o_isz)         # output tile

    for tn in tn_opts:               # largest tn first => resident W^T when it fits
        fits = [tb for tb in tb_opts if vmem_bytes(tb, tn) <= vmem_budget]
        if not fits:
            continue
        tb = fits[0]
        for cand in fits:            # prefer an even batch-tile count (v7x: 2 TCs)
            nb = pl.cdiv(B, cand)
            if nb == 1 or nb % 2 == 0:
                tb = cand
                break
        return tb, tn
    # TODO(synk): add a K (d_in) grid axis with an f32 accumulator scratch for
    # layers where even an (8, 128) weight tile does not fit the VMEM budget.
    return tb_opts[-1], tn_opts[-1]


def _masked_hidden_kernel(x_ref, wt_ref, b_ref, o_ref, *,
                          nonlinearity, compute_dtype, precision):
    x = x_ref[...]
    if x.dtype != compute_dtype:
        x = x.astype(compute_dtype)            # in-kernel cast: no extra HBM pass
    # Pre-masked, pre-transposed weight: canonical [tb,K]x[K,tn] MXU feed,
    # f32 accumulation.
    y = jnp.dot(x, wt_ref[...],
                preferred_element_type=jnp.float32, precision=precision)
    y = y + b_ref[...]                         # (1, tn) f32 broadcast
    if nonlinearity == "relu":
        y = jnp.maximum(y, 0.0)
    elif nonlinearity == "tanh":
        y = jnp.tanh(y)
    elif nonlinearity == "elu":
        y = jnp.where(y > 0.0, y, jnp.expm1(y))
    # nonlinearity None: identity.
    o_ref[...] = y.astype(o_ref.dtype)


def prepare_masked_hidden_params(weight, bias, m_k, previous_m_k,
                                 compute_dtype=jnp.bfloat16):
    """One-time parameter plumbing (do at load time / reuse across forward calls).

    Folds the MADE mask into the weight, transposes to (d_in, d_out), pads d_out
    to a lane-dense multiple of 128 and casts to the compute dtype.  Padded
    columns are exactly zero.
    """
    d_out, d_in = weight.shape
    d_out_p = _round_up(d_out, 128)
    # mask^T[i, o] = (m_k[o] >= previous_m_k[i]); MADE degrees are non-negative.
    mask_t = (m_k.astype(jnp.int32)[None, :] >=
              previous_m_k.astype(jnp.int32)[:, None])
    wt = jnp.where(mask_t, weight.T.astype(jnp.float32), 0.0)
    wt_p = jnp.zeros((d_in, d_out_p), compute_dtype)
    wt_p = wt_p.at[:, :d_out].set(wt.astype(compute_dtype))
    b = jnp.zeros((d_out,), jnp.float32) if bias is None else bias.astype(jnp.float32)
    b_p = jnp.zeros((1, d_out_p), jnp.float32).at[0, :d_out].set(b)
    return wt_p, b_p, d_out


def masked_hidden_layer_apply(x, wt_p, b_p, d_out, nonlinearity="relu",
                              block_sizes=None):
    """y = nonlin(x @ W_masked^T + b) using the prepared (masked/padded) params."""
    if nonlinearity not in ("relu", "tanh", "elu", None):
        raise NotImplementedError(
            "only relu, tanh, elu and None nonlinearities are implemented")
    B, d_in = x.shape
    assert wt_p.shape[0] == d_in
    d_out_p = wt_p.shape[1]
    compute_dtype = wt_p.dtype
    out_dtype = x.dtype

    capacity = _vmem_capacity_bytes()          # 128 MiB v5e/v6e, 64 MiB v7x
    vmem_limit = int(0.85 * capacity)
    if block_sizes is None:
        tb, tn = _choose_tiles(
            B, d_in, d_out_p,
            jnp.dtype(x.dtype).itemsize, jnp.dtype(compute_dtype).itemsize,
            jnp.dtype(out_dtype).itemsize, int(0.75 * capacity))
    else:
        tb, tn = block_sizes
    nb = pl.cdiv(B, tb)
    nn = pl.cdiv(d_out_p, tn)

    # Exact f32 parity when asked for; native bf16 MXU rate otherwise.
    precision = (jax.lax.Precision.HIGHEST
                 if compute_dtype == jnp.float32 else None)
    kernel = functools.partial(_masked_hidden_kernel, nonlinearity=nonlinearity,
                               compute_dtype=compute_dtype, precision=precision)

    w_reads = nb if nn > 1 else 1              # W^T re-streamed only when N-tiled
    cost = pl.CostEstimate(
        flops=2 * B * d_in * d_out_p,
        transcendentals=B * d_out_p if nonlinearity in ("tanh", "elu") else 0,
        bytes_accessed=(B * d_in * jnp.dtype(x.dtype).itemsize
                        + w_reads * d_in * d_out_p * jnp.dtype(compute_dtype).itemsize
                        + d_out_p * 4
                        + B * d_out_p * jnp.dtype(out_dtype).itemsize),
    )

    def call(single_buffer_invariants):
        # Grid-invariant operands (resident W^T, bias) only need one buffer.
        inv_kw = ({"pipeline_mode": pl.Buffered(1)}
                  if single_buffer_invariants else {})
        return pl.pallas_call(
            kernel,
            out_shape=jax.ShapeDtypeStruct((B, d_out_p), out_dtype),
            grid_spec=pltpu.PrefetchScalarGridSpec(
                num_scalar_prefetch=0,
                grid=(nb, nn),
                in_specs=[
                    pl.BlockSpec((tb, d_in), lambda i, j: (i, 0)),             # x
                    pl.BlockSpec((d_in, tn), lambda i, j: (0, j), **inv_kw),   # W^T
                    pl.BlockSpec((1, tn), lambda i, j: (0, j), **inv_kw),      # bias
                ],
                out_specs=pl.BlockSpec((tb, tn), lambda i, j: (i, j)),
            ),
            compiler_params=pltpu.CompilerParams(
                dimension_semantics=("parallel", "parallel"),
                vmem_limit_bytes=vmem_limit,
            ),
            cost_estimate=cost,
        )(x, wt_p, b_p)

    want_single_buffer = (nn == 1)             # W^T/bias are grid-invariant only then
    try:
        out = call(want_single_buffer)
    except Exception:
        if not want_single_buffer:
            raise
        # pipeline_mode=pl.Buffered(1) unsupported on this jax: default buffering.
        out = call(False)
    return out[:, :d_out]


def masked_hidden_layer(x, weight, bias, m_k, previous_m_k,
                        nonlinearity="relu", compute_dtype=jnp.bfloat16,
                        block_sizes=None):
    """y = nonlin(x @ (mask * weight).T + bias), mask[o,i] = m_k[o] >= previous_m_k[i]."""
    wt_p, b_p, d_out = prepare_masked_hidden_params(
        weight, bias, m_k, previous_m_k, compute_dtype=compute_dtype)
    return masked_hidden_layer_apply(x, wt_p, b_p, d_out,
                                     nonlinearity=nonlinearity,
                                     block_sizes=block_sizes)


if __name__ == "__main__":
    root = jax.random.PRNGKey(0)
    k_a, k_b, k_c, kx_a, kx_b, kx_c = jax.random.split(root, 6)

    def make_layer(key, d_in, d_out, data_dim, with_bias=True):
        kw, kb = jax.random.split(key)
        stdv = 1.0 / math.sqrt(d_in)          # reset_parameters, alt_init=False
        weight = jax.random.uniform(kw, (d_out, d_in), jnp.float32, -stdv, stdv)
        bias = (jax.random.uniform(kb, (d_out,), jnp.float32, -stdv, stdv)
                if with_bias else None)
        # output_order == 'sequential'
        m_k = jnp.tile(jnp.arange(data_dim, dtype=jnp.int32),
                       d_out // data_dim + 1)[:d_out]
        previous_m_k = jnp.arange(d_in, dtype=jnp.int32) % data_dim
        return weight, bias, m_k, previous_m_k

    def reference(x, weight, bias, m_k, previous_m_k, nonlinearity):
        mask = (m_k[:, None] >= previous_m_k[None, :]).astype(jnp.float32)
        y = jnp.dot(x, (mask * weight).T, precision=jax.lax.Precision.HIGHEST)
        if bias is not None:
            y = y + bias
        if nonlinearity == "relu":
            y = jnp.maximum(y, 0.0)
        elif nonlinearity == "tanh":
            y = jnp.tanh(y)
        elif nonlinearity == "elu":
            y = jnp.where(y > 0.0, y, jnp.expm1(y))
        return y

    # A) resident-weight path, default bf16 compute, relu.
    w, b, mk, pmk = make_layer(k_a, 32, 64, 8)
    x = jax.random.normal(kx_a, (8, 32), jnp.float32)
    y = jax.block_until_ready(
        masked_hidden_layer(x, w, b, mk, pmk, nonlinearity="relu"))
    y_ref = reference(x, w, b, mk, pmk, "relu")
    assert y.shape == (8, 64)
    assert jnp.allclose(y, y_ref, atol=2e-2, rtol=2e-2), \
        float(jnp.max(jnp.abs(y - y_ref)))

    # B) N(d_out)-tiled path with partial boundary blocks, f32 compute, elu,
    #    prepared params hoisted out of the call.
    w, b, mk, pmk = make_layer(k_b, 96, 320, 8)
    x = jax.random.normal(kx_b, (40, 96), jnp.float32)
    wt_p, b_p, d_out = prepare_masked_hidden_params(
        w, b, mk, pmk, compute_dtype=jnp.float32)
    y = jax.block_until_ready(
        masked_hidden_layer_apply(x, wt_p, b_p, d_out, nonlinearity="elu",
                                  block_sizes=(16, 128)))
    y_ref = reference(x, w, b, mk, pmk, "elu")
    assert y.shape == (40, 320)
    assert jnp.allclose(y, y_ref, atol=5e-3, rtol=5e-3), \
        float(jnp.max(jnp.abs(y - y_ref)))

    # C) no bias, identity nonlinearity, f32 compute.
    w, b, mk, pmk = make_layer(k_c, 32, 64, 8, with_bias=False)
    x = jax.random.normal(kx_c, (8, 32), jnp.float32)
    y = jax.block_until_ready(
        masked_hidden_layer(x, w, None, mk, pmk, nonlinearity=None,
                            compute_dtype=jnp.float32))
    y_ref = reference(x, w, None, mk, pmk, None)
    assert y.shape == (8, 64)
    assert jnp.allclose(y, y_ref, atol=5e-3, rtol=5e-3), \
        float(jnp.max(jnp.abs(y - y_ref)))

    print("KERNEL_OK")
</pallas_src>

<mosaic_0001>
module attributes {stable_mosaic.version = 11 : i64} {
  func.func @_masked_hidden_kernel(%arg0: i32, %arg1: i32, %arg2: memref<8x32xf32, #tpu.memory_space<vmem>>, %arg3: memref<32x128xbf16, #tpu.memory_space<vmem>>, %arg4: memref<1x128xf32, #tpu.memory_space<vmem>>, %arg5: memref<8x128xf32, #tpu.memory_space<vmem>>) attributes {dimension_semantics = [#tpu.dimension_semantics<parallel>, #tpu.dimension_semantics<parallel>], iteration_bounds = array<i64: 1, 1>, scalar_prefetch = 0 : i64, scratch_operands = 0 : i64, tpu.core_type = #tpu.core_type<tc>, window_params = [{transform_indices = @transform_0, window_bounds = array<i64: 8, 32>}, {pipeline_mode = #tpu.pipeline_mode<synchronous>, transform_indices = @transform_1, window_bounds = array<i64: 32, 128>}, {pipeline_mode = #tpu.pipeline_mode<synchronous>, transform_indices = @transform_2, window_bounds = array<i64: 1, 128>}, {transform_indices = @transform_3, window_bounds = array<i64: 8, 128>}]} {
    %c0 = arith.constant 0 : index
    %c0_0 = arith.constant 0 : index
    %0 = vector.load %arg2[%c0, %c0_0] : memref<8x32xf32, #tpu.memory_space<vmem>>, vector<8x32xf32>
    %1 = arith.truncf %0 : vector<8x32xf32> to vector<8x32xbf16>
    %c0_1 = arith.constant 0 : index
    %c0_2 = arith.constant 0 : index
    %2 = vector.load %arg3[%c0_1, %c0_2] : memref<32x128xbf16, #tpu.memory_space<vmem>>, vector<32x128xbf16>
    %cst = arith.constant dense<0.000000e+00> : vector<8x128xf32>
    %3 = tpu.matmul %1, %2, %cst {dimension_numbers = #tpu.dot_dimension_numbers<[1], [0], [0], [1], [0, 0, 1, 1], [], []>} : vector<8x32xbf16>, vector<32x128xbf16>, vector<8x128xf32> -> vector<8x128xf32>
    %c0_3 = arith.constant 0 : index
    %c0_4 = arith.constant 0 : index
    %4 = vector.load %arg4[%c0_3, %c0_4] : memref<1x128xf32, #tpu.memory_space<vmem>>, vector<1x128xf32>
    %5 = vector.broadcast %4 : vector<1x128xf32> to vector<8x128xf32>
    %6 = arith.addf %3, %5 : vector<8x128xf32>
    %cst_5 = arith.constant 0.000000e+00 : f32
    %7 = vector.broadcast %cst_5 : f32 to vector<8x128xf32>
    %8 = arith.maximumf %6, %7 : vector<8x128xf32>
    %c0_6 = arith.constant 0 : index
    %c0_7 = arith.constant 0 : index
    %9 = vector.load %arg5[%c0_6, %c0_7] : memref<8x128xf32, #tpu.memory_space<vmem>>, vector<8x128xf32>
    tpu.vector_store %arg5[%c0_6, %c0_7], %8 {strides = array<i32>} : memref<8x128xf32, #tpu.memory_space<vmem>>, vector<8x128xf32>,
    return
  }
  func.func @transform_0(%arg0: i32, %arg1: i32) -> (i32, i32) {
    %c0_i32 = arith.constant 0 : i32
    %c0_i32_0 = arith.constant 0 : i32
    return %arg0, %c0_i32 : i32, i32
  }
  func.func @transform_1(%arg0: i32, %arg1: i32) -> (i32, i32) {
    %c0_i32 = arith.constant 0 : i32
    %c0_i32_0 = arith.constant 0 : i32
    return %c0_i32, %arg1 : i32, i32
  }
  func.func @transform_2(%arg0: i32, %arg1: i32) -> (i32, i32) {
    %c0_i32 = arith.constant 0 : i32
    %c0_i32_0 = arith.constant 0 : i32
    return %c0_i32, %arg1 : i32, i32
  }
  func.func @transform_3(%arg0: i32, %arg1: i32) -> (i32, i32) {
    %c0_i32 = arith.constant 0 : i32
    return %arg0, %arg1 : i32, i32
  }
}

module attributes {stable_mosaic.version = 11 : i64} {
  func.func @_masked_hidden_kernel(%arg0: i32, %arg1: i32, %arg2: memref<8x32xf32, #tpu.memory_space<vmem>>, %arg3: memref<32x128xbf16, #tpu.memory_space<vmem>>, %arg4: memref<1x128xf32, #tpu.memory_space<vmem>>, %arg5: memref<8x128xf32, #tpu.memory_space<vmem>>) attributes {dimension_semantics = [#tpu.dimension_semantics<parallel>, #tpu.dimension_semantics<parallel>], iteration_bounds = array<i64: 1, 1>, scalar_prefetch = 0 : i64, scratch_operands = 0 : i64, tpu.core_type = #tpu.core_type<tc>, window_params = [{transform_indices = @transform_0, window_bounds = array<i64: 8, 32>}, {transform_indices = @transform_1, window_bounds = array<i64: 32, 128>}, {transform_indices = @transform_2, window_bounds = array<i64: 1, 128>}, {transform_indices = @transform_3, window_bounds = array<i64: 8, 128>}]} {
    %c0 = arith.constant 0 : index
    %c0_0 = arith.constant 0 : index
    %0 = vector.load %arg2[%c0, %c0_0] : memref<8x32xf32, #tpu.memory_space<vmem>>, vector<8x32xf32>
    %1 = arith.truncf %0 : vector<8x32xf32> to vector<8x32xbf16>
    %c0_1 = arith.constant 0 : index
    %c0_2 = arith.constant 0 : index
    %2 = vector.load %arg3[%c0_1, %c0_2] : memref<32x128xbf16, #tpu.memory_space<vmem>>, vector<32x128xbf16>
    %cst = arith.constant dense<0.000000e+00> : vector<8x128xf32>
    %3 = tpu.matmul %1, %2, %cst {dimension_numbers = #tpu.dot_dimension_numbers<[1], [0], [0], [1], [0, 0, 1, 1], [], []>} : vector<8x32xbf16>, vector<32x128xbf16>, vector<8x128xf32> -> vector<8x128xf32>
    %c0_3 = arith.constant 0 : index
    %c0_4 = arith.constant 0 : index
    %4 = vector.load %arg4[%c0_3, %c0_4] : memref<1x128xf32, #tpu.memory_space<vmem>>, vector<1x128xf32>
    %5 = vector.broadcast %4 : vector<1x128xf32> to vector<8x128xf32>
    %6 = arith.addf %3, %5 : vector<8x128xf32>
    %cst_5 = arith.constant 0.000000e+00 : f32
    %7 = vector.broadcast %cst_5 : f32 to vector<8x128xf32>
    %8 = arith.maximumf %6, %7 : vector<8x128xf32>
    %c0_6 = arith.constant 0 : index
    %c0_7 = arith.constant 0 : index
    %9 = vector.load %arg5[%c0_6, %c0_7] : memref<8x128xf32, #tpu.memory_space<vmem>>, vector<8x128xf32>
    tpu.vector_store %arg5[%c0_6, %c0_7], %8 {strides = array<i32>} : memref<8x128xf32, #tpu.memory_space<vmem>>, vector<8x128xf32>,
    return
  }
  func.func @transform_0(%arg0: i32, %arg1: i32) -> (i32, i32) {
    %c0_i32 = arith.constant 0 : i32
    %c0_i32_0 = arith.constant 0 : i32
    return %arg0, %c0_i32 : i32, i32
  }
  func.func @transform_1(%arg0: i32, %arg1: i32) -> (i32, i32) {
    %c0_i32 = arith.constant 0 : i32
    %c0_i32_0 = arith.constant 0 : i32
    return %c0_i32, %arg1 : i32, i32
  }
  func.func @transform_2(%arg0: i32, %arg1: i32) -> (i32, i32) {
    %c0_i32 = arith.constant 0 : i32
    %c0_i32_0 = arith.constant 0 : i32
    return %c0_i32, %arg1 : i32, i32
  }
  func.func @transform_3(%arg0: i32, %arg1: i32) -> (i32, i32) {
    %c0_i32 = arith.constant 0 : i32
    return %arg0, %arg1 : i32, i32
  }
}

</mosaic_0001>

<bundles_post_ra>
// kernel: tpu_custom_call.1
= control target key start
LH: loop header
LB: loop body
LE: loop exit
PB: predicated region body
PF: predicated region fallthrough
CT: control target
= control target key end

     0   :  { %8 = vsyncpa [#allocation3], 0  ;;  %s298_s0 = inlined_call_operand.hbm [shape: f32[8,32], index: 0, kind: input, shape index: {}]   ;;  %s299_s1 = inlined_call_operand.hbm [shape: bf16[32,128], index: 1, kind: input, shape index: {}]   ;;  %s300_s2 = inlined_call_operand.vmem [shape: f32[1,128], index: 2, kind: input, shape index: {}]   ;;  %s301_s3 = inlined_call_operand.hbm [shape: f32[8,128], index: 3, kind: output, shape index: {}]  }
   0x1   :  { %9 = vsyncpa [#allocation6], 0 }
   0x2   :  { %10 = vsyncpa [#allocation4], 0  ;;  %s225_s12 = smov [#allocation2]   ;;  %s226_s14 = smov [#allocation5]  }
   0x3   :  { %s17_s13 = sshll.u32 %s225_s12, 4  ;;  %s26_s15 = sshll.u32 %s226_s14, 4  ;;  %s18_s13 = int_to_ptr.vmem [resolvable:$true] %s17_s13  ;;  %s252_s15 = int_to_ptr.vmem [resolvable:$true] %s26_s15 }
   0x4   :  { %s153_s18 = scalar_lea.hbm %s298_s0, 128 }
   0x5   :  { %p154_p0 = scmp.ne.s32.totalorder %s298_s0, %s153_s18  ;;  %p157_p1 = scmp.lt.u32.totalorder %s153_s18, %s298_s0 }
   0x7   :  { %p159_p2 = pnand %p157_p1, %p154_p0 }
   0x9   :  { %162 = shalt.err (!%p159_p2)
}
   0xa   :  { %s163_s23 = scalar_lea.vmem %s18_s13, 128  ;;  %p168_p4 = scmp.lt.s32.totalorder %s18_s13, %s18_s13 }
   0xb   :  { %p164_p3 = scmp.ne.s32.totalorder %s18_s13, %s163_s23  ;;  %p169_p5 = scmp.lt.s32.totalorder %s163_s23, %s163_s23 }
   0xd   :  { %p170_p6 = por %p169_p5, %p168_p4 }
   0xf   :  { %p171_p7 = pnand %p170_p6, %p164_p3 }
  0x11   :  { %174 = shalt.err (!%p171_p7)
}
  0x12   :  { %20 = dma.hbm_to_vmem [thread:$0]  %s298_s0, 128, %s18_s13, [#allocation3]  }
  0x13   :  { %s175_s28 = scalar_lea.hbm %s299_s1, 256 }
  0x14   :  { %p176_p8 = scmp.ne.s32.totalorder %s299_s1, %s175_s28  ;;  %p179_p9 = scmp.lt.u32.totalorder %s175_s28, %s299_s1 }
  0x16   :  { %p181_p10 = pnand %p179_p9, %p176_p8 }
  0x18   :  { %184 = shalt.err (!%p181_p10)
}
  0x19   :  { %s185_s6 = scalar_lea.vmem %s252_s15, 256  ;;  %p190_p12 = scmp.lt.s32.totalorder %s252_s15, %s252_s15 }
  0x1a   :  { %p186_p11 = scmp.ne.s32.totalorder %s252_s15, %s185_s6  ;;  %p191_p13 = scmp.lt.s32.totalorder %s185_s6, %s185_s6 }
  0x1c   :  { %p192_p0 = por %p191_p13, %p190_p12 }
  0x1e   :  { %p193_p1 = pnand %p192_p0, %p186_p11 }
  0x20   :  { %196 = shalt.err (!%p193_p1)
}
  0x21   :  { %s227_s0 = smov 64   ;;  %s228_s7 = smov 4  }
  0x22   :  { %32 = dma.hbm_to_vmem [thread:$0]  %s299_s1, 256, %s252_s15, [#allocation6], %s227_s0, %s227_s0, %s228_s7  }
  0x23   :  { %219 = dma.done.wait [#allocation3], 128  }
  0x24   :  { %220 = vsyncadd [#allocation3], 4294967168 }
  0x25   :  { %221 = dma.done.wait [#allocation6], 256  }
  0x26   :  { %222 = vsyncadd [#allocation6], 4294967040  ;;  %v229_v0 = vmov 0.0   ;;  %vm230_vm0 = vmmov 0   ;;  %v151_v1 = vld [vmem:[#allocation5] sm:$0xff]   ;;  %v152_v2 = vld [vmem:[#allocation5 + $0x8] sm:$0xff]  }
  0x27   :  { %136 = vmatprep.subr.bf16.mxu0 %v229_v0  ;;  %140 = vmatprep.mubr.msk.bf16.mxu0 %vm230_vm0, %v229_v0  ;;  %v42_v3 = vld [vmem:[#allocation2] sm:$0xff]  ;;  %vm67_vm1 = vcmask 261120   ;;  %s231_s1 = smov [#allocation7]  }
  0x28   :  { %137 = vmatpush3.bf16.msra.mxu0 %v151_v1  ;;  %v43_v4 = vpack.c.bf16 %v42_v3, %v42_v3  ;;  %v129_v5 = vld [vmem:[%s300_s2] ss:$0 sm:$0xff]  ;;  %s119_s12 = sshll.u32 %s231_s1, 4  ;;  %s120_s12 = int_to_ptr.vmem [resolvable:$true] %s119_s12 }
  0x29   :  { %138 = vmatprep.subr.bf16.mxu0 %v229_v0  ;;  %s197_s13 = scalar_lea.vmem %s120_s12, 128  ;;  %p202_p3 = scmp.lt.s32.totalorder %s120_s12, %s120_s12 }
  0x2a   :  { %p198_p2 = scmp.ne.s32.totalorder %s120_s12, %s197_s13  ;;  %p203_p4 = scmp.lt.s32.totalorder %s197_s13, %s197_s13 }
  0x2c   :  { %139 = vmatpush3.bf16.msra.mxu0 %v152_v2  ;;  %p204_p5 = por %p203_p4, %p202_p3 }
  0x2e   :  { %p205_p6 = pnand %p204_p5, %p198_p2 }
  0x2f   :  { %141 = vmatmul.mubr.msk.bf16.vlgmr.msra.gmra.mrb[0].mxu0 %vm67_vm1, %v43_v4 }
 0x102   :  { %v105_v6 = vpop.f32.mrb[0].mxu0 }
 0x103   :  { %v106_v7 = vadd.f32 %v129_v5, %v105_v6  ;;  %v142_v8 = vpop.f32.mrb[1].mxu0 }
 0x104   :  { %v108_v9 = vpop.f32.mrb[2].mxu0 }
 0x105   :  { %v111_v10 = vmax.f32 %v106_v7, 0.0  ;;  %v143_v11 = vpop.f32.mrb[3].mxu0 }
 0x107   :  { %112 = vst [vmem:[#allocation7] sm:$0xff] %v111_v10 }
 0x108   :  { %208 = shalt.err (!%p205_p6)
}
 0x109   :  { %s209_s2 = scalar_lea.hbm %s301_s3, 128 }
 0x10a   :  { %p210_p7 = scmp.ne.s32.totalorder %s301_s3, %s209_s2  ;;  %p213_p8 = scmp.lt.u32.totalorder %s209_s2, %s301_s3 }
 0x10c   :  { %p215_p9 = pnand %p213_p8, %p210_p7 }
 0x10e   :  { %218 = shalt.err (!%p215_p9)
}
 0x10f   :  { %122 = dma.vmem_to_hbm [thread:$0]  %s120_s12, 128, %s301_s3, [#allocation4]  }
 0x110   :  { %223 = dma.done.wait [#allocation4], 128  }
 0x111   :  { %224 = vsyncadd [#allocation4], 4294967168 }
 0x112   :  { %126 = vsyncpa [#allocation3], 1 }
 0x113   :  { %127 = vsyncpa [#allocation6], 1 }
 0x114   :  { %128 = vsyncpa [#allocation4], 1 }

// kernel: tpu_custom_call.1
= control target key start
LH: loop header
LB: loop body
LE: loop exit
PB: predicated region body
PF: predicated region fallthrough
CT: control target
= control target key end

     0   :  { %8 = vsyncpa [#allocation3], 0  ;;  %s298_s0 = inlined_call_operand.hbm [shape: f32[8,32], index: 0, kind: input, shape index: {}]   ;;  %s299_s1 = inlined_call_operand.hbm [shape: bf16[32,128], index: 1, kind: input, shape index: {}]   ;;  %s300_s2 = inlined_call_operand.vmem [shape: f32[1,128], index: 2, kind: input, shape index: {}]   ;;  %s301_s3 = inlined_call_operand.hbm [shape: f32[8,128], index: 3, kind: output, shape index: {}]  }
   0x1   :  { %9 = vsyncpa [#allocation6], 0 }
   0x2   :  { %10 = vsyncpa [#allocation4], 0  ;;  %s225_s12 = smov [#allocation2]   ;;  %s226_s14 = smov [#allocation5]  }
   0x3   :  { %s17_s13 = sshll.u32 %s225_s12, 4  ;;  %s26_s15 = sshll.u32 %s226_s14, 4  ;;  %s18_s13 = int_to_ptr.vmem [resolvable:$true] %s17_s13  ;;  %s252_s15 = int_to_ptr.vmem [resolvable:$true] %s26_s15 }
   0x4   :  { %s153_s18 = scalar_lea.hbm %s298_s0, 128 }
   0x5   :  { %p154_p0 = scmp.ne.s32.totalorder %s298_s0, %s153_s18  ;;  %p157_p1 = scmp.lt.u32.totalorder %s153_s18, %s298_s0 }
   0x7   :  { %p159_p2 = pnand %p157_p1, %p154_p0 }
   0x9   :  { %162 = shalt.err (!%p159_p2)
}
   0xa   :  { %s163_s23 = scalar_lea.vmem %s18_s13, 128  ;;  %p168_p4 = scmp.lt.s32.totalorder %s18_s13, %s18_s13 }
   0xb   :  { %p164_p3 = scmp.ne.s32.totalorder %s18_s13, %s163_s23  ;;  %p169_p5 = scmp.lt.s32.totalorder %s163_s23, %s163_s23 }
   0xd   :  { %p170_p6 = por %p169_p5, %p168_p4 }
   0xf   :  { %p171_p7 = pnand %p170_p6, %p164_p3 }
  0x11   :  { %174 = shalt.err (!%p171_p7)
}
  0x12   :  { %20 = dma.hbm_to_vmem [thread:$0]  %s298_s0, 128, %s18_s13, [#allocation3]  }
  0x13   :  { %s175_s28 = scalar_lea.hbm %s299_s1, 256 }
  0x14   :  { %p176_p8 = scmp.ne.s32.totalorder %s299_s1, %s175_s28  ;;  %p179_p9 = scmp.lt.u32.totalorder %s175_s28, %s299_s1 }
  0x16   :  { %p181_p10 = pnand %p179_p9, %p176_p8 }
  0x18   :  { %184 = shalt.err (!%p181_p10)
}
  0x19   :  { %s185_s6 = scalar_lea.vmem %s252_s15, 256  ;;  %p190_p12 = scmp.lt.s32.totalorder %s252_s15, %s252_s15 }
  0x1a   :  { %p186_p11 = scmp.ne.s32.totalorder %s252_s15, %s185_s6  ;;  %p191_p13 = scmp.lt.s32.totalorder %s185_s6, %s185_s6 }
  0x1c   :  { %p192_p0 = por %p191_p13, %p190_p12 }
  0x1e   :  { %p193_p1 = pnand %p192_p0, %p186_p11 }
  0x20   :  { %196 = shalt.err (!%p193_p1)
}
  0x21   :  { %s227_s0 = smov 64   ;;  %s228_s7 = smov 4  }
  0x22   :  { %32 = dma.hbm_to_vmem [thread:$0]  %s299_s1, 256, %s252_s15, [#allocation6], %s227_s0, %s227_s0, %s228_s7  }
  0x23   :  { %219 = dma.done.wait [#allocation3], 128  }
  0x24   :  { %220 = vsyncadd [#allocation3], 4294967168 }
  0x25   :  { %221 = dma.done.wait [#allocation6], 256  }
  0x26   :  { %222 = vsyncadd [#allocation6], 4294967040  ;;  %v229_v0 = vmov 0.0   ;;  %vm230_vm0 = vmmov 0   ;;  %v151_v1 = vld [vmem:[#allocation5] sm:$0xff]   ;;  %v152_v2 = vld [vmem:[#allocation5 + $0x8] sm:$0xff]  }
  0x27   :  { %136 = vmatprep.subr.bf16.mxu0 %v229_v0  ;;  %140 = vmatprep.mubr.msk.bf16.mxu0 %vm230_vm0, %v229_v0  ;;  %v42_v3 = vld [vmem:[#allocation2] sm:$0xff]  ;;  %vm67_vm1 = vcmask 261120   ;;  %s231_s1 = smov [#allocation7]  }
  0x28   :  { %137 = vmatpush3.bf16.msra.mxu0 %v151_v1  ;;  %v43_v4 = vpack.c.bf16 %v42_v3, %v42_v3  ;;  %v129_v5 = vld [vmem:[%s300_s2] ss:$0 sm:$0xff]  ;;  %s119_s12 = sshll.u32 %s231_s1, 4  ;;  %s120_s12 = int_to_ptr.vmem [resolvable:$true] %s119_s12 }
  0x29   :  { %138 = vmatprep.subr.bf16.mxu0 %v229_v0  ;;  %s197_s13 = scalar_lea.vmem %s120_s12, 128  ;;  %p202_p3 = scmp.lt.s32.totalorder %s120_s12, %s120_s12 }
  0x2a   :  { %p198_p2 = scmp.ne.s32.totalorder %s120_s12, %s197_s13  ;;  %p203_p4 = scmp.lt.s32.totalorder %s197_s13, %s197_s13 }
  0x2c   :  { %139 = vmatpush3.bf16.msra.mxu0 %v152_v2  ;;  %p204_p5 = por %p203_p4, %p202_p3 }
  0x2e   :  { %p205_p6 = pnand %p204_p5, %p198_p2 }
  0x2f   :  { %141 = vmatmul.mubr.msk.bf16.vlgmr.msra.gmra.mrb[0].mxu0 %vm67_vm1, %v43_v4 }
 0x102   :  { %v105_v6 = vpop.f32.mrb[0].mxu0 }
 0x103   :  { %v106_v7 = vadd.f32 %v129_v5, %v105_v6  ;;  %v142_v8 = vpop.f32.mrb[1].mxu0 }
 0x104   :  { %v108_v9 = vpop.f32.mrb[2].mxu0 }
 0x105   :  { %v111_v10 = vmax.f32 %v106_v7, 0.0  ;;  %v143_v11 = vpop.f32.mrb[3].mxu0 }
 0x107   :  { %112 = vst [vmem:[#allocation7] sm:$0xff] %v111_v10 }
 0x108   :  { %208 = shalt.err (!%p205_p6)
}
 0x109   :  { %s209_s2 = scalar_lea.hbm %s301_s3, 128 }
 0x10a   :  { %p210_p7 = scmp.ne.s32.totalorder %s301_s3, %s209_s2  ;;  %p213_p8 = scmp.lt.u32.totalorder %s209_s2, %s301_s3 }
 0x10c   :  { %p215_p9 = pnand %p213_p8, %p210_p7 }
 0x10e   :  { %218 = shalt.err (!%p215_p9)
}
 0x10f   :  { %122 = dma.vmem_to_hbm [thread:$0]  %s120_s12, 128, %s301_s3, [#allocation4]  }
 0x110   :  { %223 = dma.done.wait [#allocation4], 128  }
 0x111   :  { %224 = vsyncadd [#allocation4], 4294967168 }
 0x112   :  { %126 = vsyncpa [#allocation3], 1 }
 0x113   :  { %127 = vsyncpa [#allocation6], 1 }
 0x114   :  { %128 = vsyncpa [#allocation4], 1 }

</bundles_post_ra>
